<compile_context>
chip_gen: v6e
topology: v6e:2x2x1
jax: 0.10.0
libtpu: 0.0.40
codegen_flags: <defaults>
</compile_context>

<pallas_src>
import jax
import jax.numpy as jnp
from jax.experimental import pallas as pl
from jax.experimental.pallas import tpu as pltpu


NUM_CHANNELS = 32
LANE = 128


# ---------------------------------------------------------------------------
# Pallas kernel: fused (stem conv + ReLU) -> (layer4 conv + ReLU)
# Everything (inputs, intermediate, output) lives in VMEM for the whole call.
# ---------------------------------------------------------------------------
def _fused_backbone_kernel(cols_ref, w1_ref, b1_ref, w2_ref, b2_ref, o_ref):
    # Stage 1 (stem): block-diagonal weight => for every layer4 output pixel
    # the four 2x2-offset stem activations come out already concatenated along
    # the lane axis, i.e. this matmul's result IS the layer4 im2col matrix.
    h = jnp.dot(cols_ref[...], w1_ref[...], preferred_element_type=jnp.float32)
    h = jnp.maximum(h + b1_ref[...], 0.0)                  # (M, P*C1), VMEM only
    # Stage 2 (layer4): output channel dim pre-padded to a lane multiple so the
    # store below is an unmasked, lane-dense vst.
    y = jnp.dot(h, w2_ref[...], preferred_element_type=jnp.float32)
    o_ref[...] = jnp.maximum(y + b2_ref[...], 0.0).astype(o_ref.dtype)


def _fused_two_stage_conv(x_nchw, w1, b1, w2, b2):
    """Two stacked Conv2d(kernel=k, stride=k) + ReLU layers (PyTorch OIHW
    weights), fused into a single Pallas call.  Returns NCHW features."""
    B, C, H, W = x_nchw.shape
    O1, I1, k1, _ = w1.shape
    O2, I2, k2, _ = w2.shape
    assert I1 == C and I2 == O1
    s = k1 * k2                                  # total stride of the fusion
    assert H % s == 0 and W % s == 0
    Ho, Wo = H // s, W // s
    P = k2 * k2                                  # layer4 spatial taps per pixel
    K1 = k1 * k1 * C                             # stem im2col patch length
    M = B * Ho * Wo
    O2p = ((O2 + LANE - 1) // LANE) * LANE       # lane-dense output width

    # Fused im2col: rows ordered (b, h2, w2); cols ordered (dh, dw, kh, kw, c).
    # Single reshape+transpose straight from NCHW (no NHWC round trip).
    cols = x_nchw.reshape(B, C, Ho, k2, k1, Wo, k2, k1)    # (B,C,h2,dh,kh,w2,dw,kw)
    cols = jnp.transpose(cols, (0, 2, 5, 3, 6, 4, 7, 1))   # (B,h2,w2,dh,dw,kh,kw,C)
    cols = cols.reshape(M, P * K1)

    # Stem weight in (kh, kw, cin) -> c1 layout, then block-diagonalised so the
    # stage-1 matmul output columns are ordered (dh, dw, c1) -- exactly the
    # (kh, kw, in) ordering layer4's reshaped weight expects.
    w1_2d = jnp.transpose(w1, (2, 3, 1, 0)).reshape(K1, O1)
    w1_blk = jnp.kron(jnp.eye(P, dtype=w1_2d.dtype), w1_2d)   # (P*K1, P*O1)
    b1_t = jnp.tile(b1, P).reshape(1, P * O1)
    w2_2d = jnp.transpose(w2, (2, 3, 1, 0)).reshape(P * O1, O2)
    # Zero-pad the output channel dim to a lane multiple (lane-dense store).
    w2_pad = jnp.pad(w2_2d, ((0, 0), (0, O2p - O2)))
    b2_pad = jnp.pad(b2.reshape(1, O2), ((0, 0), (0, O2p - O2)))

    out2d = pl.pallas_call(
        _fused_backbone_kernel,
        out_shape=jax.ShapeDtypeStruct((M, O2p), jnp.float32),
        in_specs=[pl.BlockSpec(memory_space=pltpu.MemorySpace.VMEM)] * 5,
        out_specs=pl.BlockSpec(memory_space=pltpu.MemorySpace.VMEM),
    )(cols, w1_blk, b1_t, w2_pad, b2_pad)
    # NOTE: for real DETR/ResNet shapes, replace the whole-array VMEM specs
    # with grid=(M//tm, N//tn, K//tk), "parallel" M/N axes (megacore / v7x 2TC),
    # an f32 VMEM accumulator (pl.when init/finalize) and bf16 operands.  At
    # this size (~200 KFLOPs) a single un-pipelined invocation is cheaper.

    out = out2d[:, :O2].reshape(B, Ho, Wo, O2)             # drop lane padding
    return jnp.transpose(out, (0, 3, 1, 2))                # one transpose to NCHW


# ---------------------------------------------------------------------------
# Mask resize: F.interpolate(m[None].float(), size=(h, w)) with default
# mode='nearest', then .to(bool)[0].
# TODO(synk): pure gather/indexing op — no clean Pallas equivalent on TPU, kept in JAX glue.
# ---------------------------------------------------------------------------
def interpolate_mask_nearest(mask_bool, out_h, out_w):
    B, H, W = mask_bool.shape
    m = mask_bool.astype(jnp.float32)
    rows = (jnp.arange(out_h) * H) // out_h        # torch nearest: floor(dst*in/out)
    cols = (jnp.arange(out_w) * W) // out_w
    m_ds = m[:, rows, :][:, :, cols]
    return m_ds.astype(jnp.bool_)


# ---------------------------------------------------------------------------
# BackboneBase.forward equivalent
# ---------------------------------------------------------------------------
def init_params(key):
    k1, k2, k3, k4 = jax.random.split(key, 4)
    return {
        # stem: 4 -> 16 channels, kernel=stride=2
        "stem_w": 0.1 * jax.random.normal(k1, (16, 4, 2, 2), jnp.float32),
        "stem_b": 0.01 * jax.random.normal(k2, (16,), jnp.float32),
        # layer4: 16 -> NUM_CHANNELS, kernel=stride=2
        "layer4_w": 0.1 * jax.random.normal(k3, (NUM_CHANNELS, 16, 2, 2), jnp.float32),
        "layer4_b": 0.01 * jax.random.normal(k4, (NUM_CHANNELS,), jnp.float32),
    }


@jax.jit
def backbone_base_forward(tensors, mask, params):
    """tensors: (B, C, H, W) float32 NCHW; mask: (B, H, W) bool (True = padding).

    Returns dict {name: (features_NCHW, mask_bool)} mirroring
    {name: NestedTensor(x, mask)} with return_interm_layers=False.
    """
    # self.body(tensor_list.tensors) -> {'0': layer4_features}, fused in one kernel.
    x = _fused_two_stage_conv(tensors,
                              params["stem_w"], params["stem_b"],
                              params["layer4_w"], params["layer4_b"])
    xs = {"0": x}

    out = {}
    for name, feat in xs.items():
        h, w = feat.shape[-2], feat.shape[-1]
        out[name] = (feat, interpolate_mask_nearest(mask, h, w))
    return out


if __name__ == "__main__":
    key = jax.random.PRNGKey(0)
    kx, kp = jax.random.split(key)

    B, C, H, W = 2, 4, 16, 16
    x = jax.random.normal(kx, (B, C, H, W), jnp.float32)

    # Padding mask like NestedTensor.mask: True where padded.
    mask = jnp.zeros((B, H, W), jnp.bool_)
    mask = mask.at[1, 12:, :].set(True)   # second sample padded in last rows
    mask = mask.at[1, :, 14:].set(True)   # and last cols

    params = init_params(kp)

    out = backbone_base_forward(x, mask, params)
    feat, m = out["0"]
    jax.block_until_ready(feat)
    jax.block_until_ready(m)

    assert feat.shape == (B, NUM_CHANNELS, 4, 4), feat.shape
    assert feat.dtype == jnp.float32
    assert m.shape == (B, 4, 4), m.shape
    assert m.dtype == jnp.bool_

    # Numerical check of the fused kernel against a plain XLA conv reference.
    def _conv_relu(xx, w, b):
        y = jax.lax.conv_general_dilated(
            xx, w, window_strides=(2, 2), padding="VALID",
            dimension_numbers=("NCHW", "OIHW", "NCHW"),
            precision=jax.lax.Precision.HIGHEST)
        return jnp.maximum(y + b[None, :, None, None], 0.0)

    ref = _conv_relu(_conv_relu(x, params["stem_w"], params["stem_b"]),
                     params["layer4_w"], params["layer4_b"])
    assert jnp.allclose(feat, ref, atol=1e-3, rtol=1e-3), \
        float(jnp.max(jnp.abs(feat - ref)))

    # Mask reference: nearest-neighbor floor(dst*in/out) indexing.
    assert bool(jnp.array_equal(m[0], jnp.zeros((4, 4), jnp.bool_)))

    print("KERNEL_OK")
</pallas_src>

<mosaic_0001>
module attributes {stable_mosaic.version = 11 : i64} {
  func.func @_fused_backbone_kernel(%arg0: memref<32x64xf32, #tpu.memory_space<vmem>>, %arg1: memref<64x64xf32, #tpu.memory_space<vmem>>, %arg2: memref<1x64xf32, #tpu.memory_space<vmem>>, %arg3: memref<64x128xf32, #tpu.memory_space<vmem>>, %arg4: memref<1x128xf32, #tpu.memory_space<vmem>>, %arg5: memref<32x128xf32, #tpu.memory_space<vmem>>) attributes {dimension_semantics = [], scalar_prefetch = 0 : i64, scratch_operands = 0 : i64, tpu.core_type = #tpu.core_type<tc>} {
    %c0 = arith.constant 0 : index
    %c0_0 = arith.constant 0 : index
    %0 = vector.load %arg0[%c0, %c0_0] : memref<32x64xf32, #tpu.memory_space<vmem>>, vector<32x64xf32>
    %c0_1 = arith.constant 0 : index
    %c0_2 = arith.constant 0 : index
    %1 = vector.load %arg1[%c0_1, %c0_2] : memref<64x64xf32, #tpu.memory_space<vmem>>, vector<64x64xf32>
    %cst = arith.constant dense<0.000000e+00> : vector<32x64xf32>
    %2 = tpu.matmul %0, %1, %cst {dimension_numbers = #tpu.dot_dimension_numbers<[1], [0], [0], [1], [0, 0, 1, 1], [], []>} : vector<32x64xf32>, vector<64x64xf32>, vector<32x64xf32> -> vector<32x64xf32>
    %c0_3 = arith.constant 0 : index
    %c0_4 = arith.constant 0 : index
    %3 = vector.load %arg2[%c0_3, %c0_4] : memref<1x64xf32, #tpu.memory_space<vmem>>, vector<1x64xf32>
    %4 = vector.broadcast %3 : vector<1x64xf32> to vector<32x64xf32>
    %5 = arith.addf %2, %4 : vector<32x64xf32>
    %cst_5 = arith.constant 0.000000e+00 : f32
    %6 = vector.broadcast %cst_5 : f32 to vector<32x64xf32>
    %7 = arith.maximumf %5, %6 : vector<32x64xf32>
    %c0_6 = arith.constant 0 : index
    %c0_7 = arith.constant 0 : index
    %8 = vector.load %arg3[%c0_6, %c0_7] : memref<64x128xf32, #tpu.memory_space<vmem>>, vector<64x128xf32>
    %cst_8 = arith.constant dense<0.000000e+00> : vector<32x128xf32>
    %9 = tpu.matmul %7, %8, %cst_8 {dimension_numbers = #tpu.dot_dimension_numbers<[1], [0], [0], [1], [0, 0, 1, 1], [], []>} : vector<32x64xf32>, vector<64x128xf32>, vector<32x128xf32> -> vector<32x128xf32>
    %c0_9 = arith.constant 0 : index
    %c0_10 = arith.constant 0 : index
    %10 = vector.load %arg4[%c0_9, %c0_10] : memref<1x128xf32, #tpu.memory_space<vmem>>, vector<1x128xf32>
    %11 = vector.broadcast %10 : vector<1x128xf32> to vector<32x128xf32>
    %12 = arith.addf %9, %11 : vector<32x128xf32>
    %cst_11 = arith.constant 0.000000e+00 : f32
    %13 = vector.broadcast %cst_11 : f32 to vector<32x128xf32>
    %14 = arith.maximumf %12, %13 : vector<32x128xf32>
    %c0_12 = arith.constant 0 : index
    %c0_13 = arith.constant 0 : index
    %15 = vector.load %arg5[%c0_12, %c0_13] : memref<32x128xf32, #tpu.memory_space<vmem>>, vector<32x128xf32>
    tpu.vector_store %arg5[%c0_12, %c0_13], %14 {strides = array<i32>} : memref<32x128xf32, #tpu.memory_space<vmem>>, vector<32x128xf32>,
    return
  }
}

</mosaic_0001>

<bundles_post_ra>
// kernel: tile.8
= control target key start
LH: loop header
LB: loop body
LE: loop exit
PB: predicated region body
PF: predicated region fallthrough
CT: control target
= control target key end

     0   :  { %s22_s0 = inlined_call_operand.vmem [shape: f32[16], index: 0, kind: input, shape index: {}]   ;;  %s23_s1 = inlined_call_operand.vmem [shape: f32[4,16], index: 1, kind: output, shape index: {}]  }
   0x1   :  { %v4_v0 = vld [vmem:[%s22_s0] ss:$0 sm:$0xff] }
   0x2   :  { %5 = vst [vmem:[%s23_s1] sm:$0xf] %v4_v0 }

// kernel: tile.9
= control target key start
LH: loop header
LB: loop body
LE: loop exit
PB: predicated region body
PF: predicated region fallthrough
CT: control target
= control target key end

     0   :  { %vm8_vm0 = vcmask 130048   ;;  %s40_s8 = smov 16   ;;  %s41_s9 = smov 32   ;;  %vm14_vm1 = vcmask 523648   ;;  %vm20_vm2 = vcmask 392448   ;;  %vm26_vm3 = vcmask 261248   ;;  %s58_s0 = inlined_call_operand.vmem [shape: f32[4,16], index: 0, kind: input, shape index: {}]   ;;  %s59_s1 = inlined_call_operand.vmem [shape: f32[1,64], index: 1, kind: output, shape index: {}]  }
   0x1   :  { %v5_v0 = vld [vmem:[%s58_s0] sm:$0xf]  ;;  %s39_s0 = smov 48  }
   0x2   :  { %6 = vst [vmem:[#allocation1] sm:$0xf] %v5_v0 }
   0x9   :  { %v11_v1 = vld [vmem:[#allocation1 + $0x3] sm:$0x1]   ;;  %v23_v2 = vld [vmem:[#allocation1 + $0x1] sm:$0x1]   ;;  %v7_v3 = vld [vmem:[#allocation1] sm:$0x1]  }
   0xa   :  { %12 = vrot.lane.b32.xlu0 %v11_v1, %s39_s0  ;;  %24 = vrot.lane.b32.xlu1 %v23_v2, %s40_s8  ;;  %v17_v4 = vld [vmem:[#allocation1 + $0x2] sm:$0x1]   ;;  %9 = vst.msk [vmem:[#allocation0] sm:$0x1] %vm8_vm0, %v7_v3  }
   0xe   :  { %18 = vrot.lane.b32.xlu0 %v17_v4, %s41_s9 }
  0x7c   :  { %v13_v5 = vpop.permute.xlu0 %12   ;;  %v25_v6 = vpop.permute.xlu1 %24  }
  0x7d   :  { %15 = vst.msk [vmem:[#allocation0] sm:$0x1] %vm14_vm1, %v13_v5  }
  0x80   :  { %v19_v7 = vpop.permute.xlu0 %18  }
  0x81   :  { %21 = vst.msk [vmem:[#allocation0] sm:$0x1] %vm20_vm2, %v19_v7  }
  0x82   :  { %27 = vst.msk [vmem:[#allocation0] sm:$0x1] %vm26_vm3, %v25_v6  }
  0x89   :  { %v32_v8 = vld [vmem:[#allocation0] sm:$0x1] }
  0x8a   :  { %35 = vst [vmem:[%s59_s1] sm:$0x1] %v32_v8 }

// kernel: backbone_base_forward.1
= control target key start
LH: loop header
LB: loop body
LE: loop exit
PB: predicated region body
PF: predicated region fallthrough
CT: control target
= control target key end

     0   :  { %vm40_vm0 = vcmask 523264   ;;  %s491_s0 = inlined_call_operand.vmem [shape: f32[32,64], index: 0, kind: input, shape index: {}]   ;;  %s492_s1 = inlined_call_operand.vmem [shape: f32[64,64], index: 1, kind: input, shape index: {}]   ;;  %s493_s2 = inlined_call_operand.vmem [shape: f32[1,64], index: 2, kind: input, shape index: {}]   ;;  %s494_s3 = inlined_call_operand.vmem [shape: f32[64,128], index: 3, kind: input, shape index: {}]   ;;  %s495_s4 = inlined_call_operand.vmem [shape: f32[1,128], index: 4, kind: input, shape index: {}]   ;;  %s496_s5 = inlined_call_operand.hbm [shape: f32[32,128], index: 5, kind: output, shape index: {}]  }
   0x1   :  { %v32_v0 = vld [vmem:[%s492_s1 + $0x38] sm:$0xff]  ;;  %v31_v1 = vld [vmem:[%s492_s1 + $0x30] sm:$0xff]  ;;  %v30_v2 = vld [vmem:[%s492_s1 + $0x28] sm:$0xff] }
   0x2   :  { %312 = vmatprep.subr.mxu0 %v32_v0  ;;  %v21_v3 = vld [vmem:[%s491_s0] sm:$0xff]  ;;  %v149_v5 = vld [vmem:[%s494_s3 + $0x38] sm:$0xff]  ;;  %v148_v6 = vld [vmem:[%s494_s3 + $0x30] sm:$0xff] }
   0x3   :  { %313 = vmatpush3.msra.mxu0 %v32_v0  ;;  %328 = vmatprep.mubr.msk.f32.mxu0 %vm40_vm0, %v21_v3  ;;  %v29_v4 = vld [vmem:[%s492_s1 + $0x20] sm:$0xff] }
   0x4   :  { %314 = vmatprep.subr.mxu0 %v31_v1  ;;  %334 = vmatprep.subr.mxu1 %v149_v5 }
   0x5   :  { %315 = vmatpush3.msra.mxu0 %v31_v1 }
   0x6   :  { %316 = vmatprep.subr.mxu0 %v30_v2 }
   0x7   :  { %10 = vsyncpa [#allocation3], 0  ;;  %317 = vmatpush3.msra.mxu0 %v30_v2  ;;  %v28_v7 = vld [vmem:[%s492_s1 + $0x18] sm:$0xff]  ;;  %335 = vmatpush3.msra.mxu1 %v149_v5  ;;  %v147_v8 = vld [vmem:[%s494_s3 + $0x28] sm:$0xff]  ;;  %s381_s8 = smov [#allocation2]  }
   0x8   :  { %318 = vmatprep.subr.mxu0 %v29_v4  ;;  %336 = vmatprep.subr.mxu1 %v148_v6  ;;  %v27_v9 = vld [vmem:[%s492_s1 + $0x10] sm:$0xff]  ;;  %v146_v10 = vld [vmem:[%s494_s3 + $0x20] sm:$0xff]  ;;  %v26_v11 = vld [vmem:[%s492_s1 + $0x8] sm:$0xff]  ;;  %s267_s9 = sshll.u32 %s381_s8, 4  ;;  %s268_s9 = int_to_ptr.vmem [resolvable:$true] %s267_s9 }
   0x9   :  { %319 = vmatpush3.msra.mxu0 %v29_v4  ;;  %337 = vmatpush3.msra.mxu1 %v148_v6  ;;  %v25_v12 = vld [vmem:[%s492_s1] sm:$0xff]  ;;  %v22_v13 = vld [vmem:[%s491_s0 + $0x8] sm:$0xff]  ;;  %v23_v14 = vld [vmem:[%s491_s0 + $0x10] sm:$0xff]  ;;  %p364_p1 = scmp.lt.s32.totalorder %s268_s9, %s268_s9 }
   0xa   :  { %320 = vmatprep.subr.mxu0 %v28_v7  ;;  %338 = vmatprep.subr.mxu1 %v147_v8  ;;  %v24_v15 = vld [vmem:[%s491_s0 + $0x18] sm:$0xff]  ;;  %v144_v17 = vld [vmem:[%s494_s3 + $0x10] sm:$0xff]  ;;  %v143_v18 = vld [vmem:[%s494_s3 + $0x8] sm:$0xff] }
   0xb   :  { %321 = vmatpush3.msra.mxu0 %v28_v7  ;;  %339 = vmatpush3.msra.mxu1 %v147_v8  ;;  %v145_v16 = vld [vmem:[%s494_s3 + $0x18] sm:$0xff]  ;;  %v142_v19 = vld [vmem:[%s494_s3] sm:$0xff] }
   0xc   :  { %322 = vmatprep.subr.mxu0 %v27_v9  ;;  %340 = vmatprep.subr.mxu1 %v146_v10  ;;  %v278_v20 = vld [vmem:[%s493_s2] ss:$0 sm:$0xff] }
   0xd   :  { %323 = vmatpush3.msra.mxu0 %v27_v9  ;;  %341 = vmatpush3.msra.mxu1 %v146_v10  ;;  %v283_v33 = vld [vmem:[%s495_s4] ss:$0 sm:$0xff]  ;;  %s359_s4 = scalar_lea.vmem %s268_s9, 512 }
   0xe   :  { %324 = vmatprep.subr.mxu0 %v26_v11  ;;  %342 = vmatprep.subr.mxu1 %v145_v16  ;;  %p360_p0 = scmp.ne.s32.totalorder %s268_s9, %s359_s4  ;;  %p365_p2 = scmp.lt.s32.totalorder %s359_s4, %s359_s4 }
   0xf   :  { %325 = vmatpush3.msra.mxu0 %v26_v11  ;;  %343 = vmatpush3.msra.mxu1 %v145_v16 }
  0x10   :  { %326 = vmatprep.subr.mxu0 %v25_v12  ;;  %344 = vmatprep.subr.mxu1 %v144_v17  ;;  %p366_p3 = por %p365_p2, %p364_p1 }
  0x11   :  { %327 = vmatpush3.msra.mxu0 %v25_v12  ;;  %345 = vmatpush3.msra.mxu1 %v144_v17 }
  0x12   :  { %329 = vmatmul.mubr.msk.f32.vlgmr.msra.gmra.mxu0 %vm40_vm0, %v22_v13  ;;  %346 = vmatprep.subr.mxu1 %v143_v18  ;;  %p367_p4 = pnand %p366_p3, %p360_p0 }
  0x13   :  { %331 = vmatprep.mubr.msk.f32.mxu0 %vm40_vm0, %v23_v14  ;;  %347 = vmatpush3.msra.mxu1 %v143_v18 }
  0x14   :  { %348 = vmatprep.subr.mxu1 %v142_v19 }
  0x15   :  { %349 = vmatpush3.msra.mxu1 %v142_v19 }
  0x16   :  { %332 = vmatmul.mubr.msk.f32.gmra.mxu0 %vm40_vm0, %v24_v15 }
  0xd2   :  { %v330_v21 = vpop.f32.mrf.mxu0 }
  0xd3   :  { %v125_v22 = vadd.f32 %v330_v21, %v278_v20 }
  0xd4   :  { %v119_v23 = vpop.f32.mrf.mxu0 }
  0xd5   :  { %v120_v24 = vadd.f32 %v278_v20, %v119_v23  ;;  %v139_v27 = vmax.f32 %v125_v22, 0.0 }
  0xd6   :  { %v333_v25 = vpop.f32.mrf.mxu0 }
  0xd7   :  { %v138_v26 = vmax.f32 %v120_v24, 0.0  ;;  %v135_v28 = vadd.f32 %v333_v25, %v278_v20 }
  0xd8   :  { %v129_v29 = vpop.f32.mrf.mxu0 }
  0xd9   :  { %v130_v30 = vadd.f32 %v278_v20, %v129_v29  ;;  %350 = vmatprep.mubr.msk.f32.mxu1 %vm40_vm0, %v138_v26  ;;  %v141_v32 = vmax.f32 %v135_v28, 0.0 }
  0xda   :  { %351 = vmatmul.mubr.msk.f32.vlgmr.msra.gmra.mxu1 %vm40_vm0, %v139_v27 }
  0xdb   :  { %v140_v31 = vmax.f32 %v130_v30, 0.0 }
  0xdd   :  { %353 = vmatprep.mubr.msk.f32.mxu1 %vm40_vm0, %v140_v31 }
  0xde   :  { %354 = vmatmul.mubr.msk.f32.gmra.mxu1 %vm40_vm0, %v141_v32 }
 0x19a   :  { %v352_v34 = vpop.f32.mrf.mxu1 }
 0x19b   :  { %v241_v35 = vadd.f32 %v352_v34, %v283_v33 }
 0x19c   :  { %v235_v36 = vpop.f32.mrf.mxu1 }
 0x19d   :  { %v255_v37 = vmax.f32 %v241_v35, 0.0  ;;  %v236_v38 = vadd.f32 %v283_v33, %v235_v36 }
 0x19e   :  { %v355_v39 = vpop.f32.mrf.mxu1 }
 0x19f   :  { %259 = vst [vmem:[#allocation2 + $0x8] sm:$0xff] %v255_v37  ;;  %v254_v40 = vmax.f32 %v236_v38, 0.0  ;;  %v251_v41 = vadd.f32 %v355_v39, %v283_v33 }
 0x1a0   :  { %v245_v42 = vpop.f32.mrf.mxu1 }
 0x1a1   :  { %258 = vst [vmem:[#allocation2] sm:$0xff] %v254_v40  ;;  %v257_v43 = vmax.f32 %v251_v41, 0.0  ;;  %v246_v44 = vadd.f32 %v283_v33, %v245_v42 }
 0x1a3   :  { %261 = vst [vmem:[#allocation2 + $0x18] sm:$0xff] %v257_v43  ;;  %v256_v45 = vmax.f32 %v246_v44, 0.0 }
 0x1a5   :  { %260 = vst [vmem:[#allocation2 + $0x10] sm:$0xff] %v256_v45 }
 0x1a6   :  { %370 = shalt.err (!%p367_p4)
}
 0x1a7   :  { %s382_s10 = smov 128   ;;  %s383_s11 = smov 8  }
 0x1a8   :  { %273 = dma.vmem_to_hbm [thread:$0]  %s268_s9, 512, %s496_s5, [#allocation3], %s382_s10, %s382_s10, %s383_s11  }
 0x1a9   :  { %379 = dma.done.wait [#allocation3], 512  }
 0x1aa   :  { %380 = vsyncadd [#allocation3], 4294966784 }
 0x1ab   :  { %277 = vsyncpa [#allocation3], 1 }

</bundles_post_ra>
